<compile_context>
chip_gen: v7x
topology: tpu7x:2x2x1
jax: 0.10.0
libtpu: 0.0.40
codegen_flags: <defaults>
</compile_context>

<pallas_src>
import jax
import jax.numpy as jnp
from jax.experimental import pallas as pl
from jax.experimental.pallas import tpu as pltpu

LANE = 128
SUBLANE = 8
MIN_TB = 16  # bf16 packs 16 rows per sublane-pair; keep tiles cleanly packed.


def _round_up(n, m):
    return (n + m - 1) // m * m


def cohen_mlp_kernel(x_ref, w1_ref, b1_ref, w2_ref, b2_ref, w3_ref, b3_ref, o_ref):
    # x arrives f32 straight from HBM; cast to bf16 in-kernel (VPU filler).
    x = x_ref[...].astype(w1_ref.dtype)
    # fc1 + ReLU: bf16 MXU matmul (K=350, unaligned contraction handled by Mosaic),
    # f32 accumulation; bias/ReLU in f32 on the VPU.
    h = jnp.dot(x, w1_ref[...], preferred_element_type=jnp.float32)
    h = jnp.maximum(h + b1_ref[...], 0.0).astype(w2_ref.dtype)
    # fc2 + ReLU (bf16 inter-layer hand-off halves spill traffic at large tiles).
    h = jnp.dot(h, w2_ref[...], preferred_element_type=jnp.float32)
    h = jnp.maximum(h + b2_ref[...], 0.0).astype(w3_ref.dtype)
    # fc3 (no activation); lane-dense 128-col bf16 output block (no masked vst).
    out = jnp.dot(h, w3_ref[...], preferred_element_type=jnp.float32)
    o_ref[...] = (out + b3_ref[...]).astype(o_ref.dtype)


def init_params(key, ch_in=350, hidden=300, ch_out=5, dtype=jnp.float32):
    """Deterministic init mimicking PyTorch nn.Linear default (uniform +/- 1/sqrt(fan_in))."""
    ks = jax.random.split(key, 6)

    def linear(kw, kb, fan_in, fan_out):
        bound = 1.0 / jnp.sqrt(fan_in)
        w = jax.random.uniform(kw, (fan_in, fan_out), dtype, -bound, bound)
        b = jax.random.uniform(kb, (1, fan_out), dtype, -bound, bound)
        return w, b

    w1, b1 = linear(ks[0], ks[1], ch_in, hidden)
    w2, b2 = linear(ks[2], ks[3], hidden, hidden)
    w3, b3 = linear(ks[4], ks[5], hidden, ch_out)
    return {"w1": w1, "b1": b1, "w2": w2, "b2": b2, "w3": w3, "b3": b3}


def prepare_params(params, compute_dtype=jnp.bfloat16):
    """Zero-pad hidden/output feature dims to multiples of 128; cast weights to bf16.

    w1's contraction dim stays at ch_in (350): the x BlockSpec uses a full-extent
    last dim so no wrapper-side pad/cast of x is needed. Padded rows/cols are exact
    zeros, so they pass through bias-add/ReLU unchanged and are sliced off after
    the kernel.
    """
    def pad2(a, rows, cols):
        r, c = a.shape
        return jnp.pad(a, ((0, rows - r), (0, cols - c)))

    ci, hid = params["w1"].shape
    _, co = params["w3"].shape
    h_p = _round_up(hid, LANE)    # 300 -> 384 (do NOT pad to 512; no MXU benefit)
    co_p = _round_up(co, LANE)    # 5   -> 128 (lane-dense output store)

    padded = {
        "w1": pad2(params["w1"], ci, h_p).astype(compute_dtype),
        "b1": pad2(params["b1"], 1, h_p).astype(jnp.float32),
        "w2": pad2(params["w2"], h_p, h_p).astype(compute_dtype),
        "b2": pad2(params["b2"], 1, h_p).astype(jnp.float32),
        "w3": pad2(params["w3"], h_p, co_p).astype(compute_dtype),
        "b3": pad2(params["b3"], 1, co_p).astype(jnp.float32),
    }
    meta = {
        "ch_in": ci, "ch_out": co,
        "hidden_p": h_p, "ch_out_p": co_p,
        "compute_dtype": compute_dtype,
    }
    return padded, meta


def cohen_model_forward(x, padded_params, meta, *, block_b=1024):
    """x: (B, ch_in) float32. Returns (B, ch_out) float32."""
    p = padded_params
    B, ci = x.shape
    assert ci == meta["ch_in"]
    h_p, co_p = meta["hidden_p"], meta["ch_out_p"]
    ch_out = meta["ch_out"]

    # Batch tile: as large as possible (amortizes the ~0.35 us/step overhead and
    # the resident-weight touches, fills the 256-wide MXU on v6e/v7x), but split
    # so the grid has >=2 steps whenever B allows it (both v7x TensorCores work).
    tb = max(MIN_TB, min(block_b, _round_up(pl.cdiv(B, 2), SUBLANE)))
    b_p = _round_up(B, tb)
    if b_p != B:
        # Only the batch dim is padded (feature dim stays at ch_in=350); the
        # zero rows produce zero output rows that get sliced off below.
        x = jnp.pad(x, ((0, b_p - B), (0, 0)))

    grid = (b_p // tb,)

    def wspec(shape):
        # Constant index_map -> same block every step -> weights/biases stay
        # resident in VMEM (DMA'd once, not re-fetched per grid step).
        return pl.BlockSpec(shape, lambda i: (0, 0))

    bytes_accessed = int(
        b_p * ci * x.dtype.itemsize
        + sum(int(v.size) * v.dtype.itemsize for v in p.values())
        + b_p * co_p * 2  # bf16 output
    )
    flops = int(2 * b_p * (ci * h_p + h_p * h_p + h_p * co_p))

    out = pl.pallas_call(
        cohen_mlp_kernel,
        out_shape=jax.ShapeDtypeStruct((b_p, co_p), jnp.bfloat16),
        grid=grid,
        in_specs=[
            pl.BlockSpec((tb, ci), lambda i: (i, 0)),   # x tile, f32, full-extent last dim
            wspec((ci, h_p)), wspec((1, h_p)),          # w1, b1
            wspec((h_p, h_p)), wspec((1, h_p)),         # w2, b2
            wspec((h_p, co_p)), wspec((1, co_p)),       # w3, b3
        ],
        out_specs=pl.BlockSpec((tb, co_p), lambda i: (i, 0)),
        compiler_params=pltpu.CompilerParams(
            dimension_semantics=("parallel",),
            vmem_limit_bytes=32 * 1024 * 1024,  # headroom above v5e's 16 MiB default
        ),
        cost_estimate=pl.CostEstimate(
            flops=flops, transcendentals=0, bytes_accessed=bytes_accessed),
    )(x, p["w1"], p["b1"], p["w2"], p["b2"], p["w3"], p["b3"])

    # Slice off batch padding and the 123 padded output lanes; return f32.
    return out[:B, :ch_out].astype(jnp.float32)


def reference_forward(x, params):
    """Pure-JAX reference matching the kernel's precision policy:
    bf16 matmul inputs, f32 accumulation, f32 bias/ReLU, bf16 output store."""
    def mm(a, w):
        return jnp.dot(a.astype(jnp.bfloat16).astype(jnp.float32),
                       w.astype(jnp.bfloat16).astype(jnp.float32))
    h = jnp.maximum(mm(x, params["w1"]) + params["b1"], 0.0)
    h = jnp.maximum(mm(h, params["w2"]) + params["b2"], 0.0)
    y = mm(h, params["w3"]) + params["b3"]
    return y.astype(jnp.bfloat16).astype(jnp.float32)


if __name__ == "__main__":
    key = jax.random.PRNGKey(0)
    k_param, k_x = jax.random.split(key)

    CH_IN, HIDDEN, CH_OUT = 350, 300, 5
    params = init_params(k_param, CH_IN, HIDDEN, CH_OUT)
    padded_params, meta = prepare_params(params)

    ok = True
    for batch in (8, 256):  # single-block path and multi-step (2-TC-friendly) path
        x = jax.random.normal(jax.random.fold_in(k_x, batch), (batch, CH_IN), jnp.float32)
        out = jax.block_until_ready(cohen_model_forward(x, padded_params, meta))
        ref = reference_forward(x, params)
        ok &= out.shape == (batch, CH_OUT)
        ok &= bool(jnp.allclose(out, ref, atol=1e-2, rtol=1e-2))

    assert ok
    print("KERNEL_OK")
</pallas_src>

<mosaic_0001>
module attributes {stable_mosaic.version = 11 : i64} {
  func.func @cohen_mlp_kernel(%arg0: i32, %arg1: memref<16x350xf32, #tpu.memory_space<vmem>>, %arg2: memref<350x384xbf16, #tpu.memory_space<vmem>>, %arg3: memref<1x384xf32, #tpu.memory_space<vmem>>, %arg4: memref<384x384xbf16, #tpu.memory_space<vmem>>, %arg5: memref<1x384xf32, #tpu.memory_space<vmem>>, %arg6: memref<384x128xbf16, #tpu.memory_space<vmem>>, %arg7: memref<1x128xf32, #tpu.memory_space<vmem>>, %arg8: memref<16x128xbf16, #tpu.memory_space<vmem>>) attributes {dimension_semantics = [#tpu.dimension_semantics<parallel>], iteration_bounds = array<i64: 1>, scalar_prefetch = 0 : i64, scratch_operands = 0 : i64, tpu.core_type = #tpu.core_type<tc>, window_params = [{transform_indices = @transform_0, window_bounds = array<i64: 16, 350>}, {pipeline_mode = #tpu.pipeline_mode<synchronous>, transform_indices = @transform_1, window_bounds = array<i64: 350, 384>}, {pipeline_mode = #tpu.pipeline_mode<synchronous>, transform_indices = @transform_2, window_bounds = array<i64: 1, 384>}, {pipeline_mode = #tpu.pipeline_mode<synchronous>, transform_indices = @transform_3, window_bounds = array<i64: 384, 384>}, {pipeline_mode = #tpu.pipeline_mode<synchronous>, transform_indices = @transform_4, window_bounds = array<i64: 1, 384>}, {pipeline_mode = #tpu.pipeline_mode<synchronous>, transform_indices = @transform_5, window_bounds = array<i64: 384, 128>}, {pipeline_mode = #tpu.pipeline_mode<synchronous>, transform_indices = @transform_6, window_bounds = array<i64: 1, 128>}, {transform_indices = @transform_7, window_bounds = array<i64: 16, 128>}]} {
    %c0 = arith.constant 0 : index
    %c0_0 = arith.constant 0 : index
    %0 = vector.load %arg1[%c0, %c0_0] : memref<16x350xf32, #tpu.memory_space<vmem>>, vector<16x350xf32>
    %1 = arith.truncf %0 : vector<16x350xf32> to vector<16x350xbf16>
    %c0_1 = arith.constant 0 : index
    %c0_2 = arith.constant 0 : index
    %2 = vector.load %arg2[%c0_1, %c0_2] : memref<350x384xbf16, #tpu.memory_space<vmem>>, vector<350x384xbf16>
    %cst = arith.constant dense<0.000000e+00> : vector<16x384xf32>
    %3 = tpu.matmul %1, %2, %cst {dimension_numbers = #tpu.dot_dimension_numbers<[1], [0], [0], [1], [0, 0, 1, 1], [], []>} : vector<16x350xbf16>, vector<350x384xbf16>, vector<16x384xf32> -> vector<16x384xf32>
    %c0_3 = arith.constant 0 : index
    %c0_4 = arith.constant 0 : index
    %4 = vector.load %arg3[%c0_3, %c0_4] : memref<1x384xf32, #tpu.memory_space<vmem>>, vector<1x384xf32>
    %5 = vector.broadcast %4 : vector<1x384xf32> to vector<16x384xf32>
    %6 = arith.addf %3, %5 : vector<16x384xf32>
    %cst_5 = arith.constant 0.000000e+00 : f32
    %7 = vector.broadcast %cst_5 : f32 to vector<16x384xf32>
    %8 = arith.maximumf %6, %7 : vector<16x384xf32>
    %9 = arith.truncf %8 : vector<16x384xf32> to vector<16x384xbf16>
    %c0_6 = arith.constant 0 : index
    %c0_7 = arith.constant 0 : index
    %10 = vector.load %arg4[%c0_6, %c0_7] : memref<384x384xbf16, #tpu.memory_space<vmem>>, vector<384x384xbf16>
    %cst_8 = arith.constant dense<0.000000e+00> : vector<16x384xf32>
    %11 = tpu.matmul %9, %10, %cst_8 {dimension_numbers = #tpu.dot_dimension_numbers<[1], [0], [0], [1], [0, 0, 1, 1], [], []>} : vector<16x384xbf16>, vector<384x384xbf16>, vector<16x384xf32> -> vector<16x384xf32>
    %c0_9 = arith.constant 0 : index
    %c0_10 = arith.constant 0 : index
    %12 = vector.load %arg5[%c0_9, %c0_10] : memref<1x384xf32, #tpu.memory_space<vmem>>, vector<1x384xf32>
    %13 = vector.broadcast %12 : vector<1x384xf32> to vector<16x384xf32>
    %14 = arith.addf %11, %13 : vector<16x384xf32>
    %cst_11 = arith.constant 0.000000e+00 : f32
    %15 = vector.broadcast %cst_11 : f32 to vector<16x384xf32>
    %16 = arith.maximumf %14, %15 : vector<16x384xf32>
    %17 = arith.truncf %16 : vector<16x384xf32> to vector<16x384xbf16>
    %c0_12 = arith.constant 0 : index
    %c0_13 = arith.constant 0 : index
    %18 = vector.load %arg6[%c0_12, %c0_13] : memref<384x128xbf16, #tpu.memory_space<vmem>>, vector<384x128xbf16>
    %cst_14 = arith.constant dense<0.000000e+00> : vector<16x128xf32>
    %19 = tpu.matmul %17, %18, %cst_14 {dimension_numbers = #tpu.dot_dimension_numbers<[1], [0], [0], [1], [0, 0, 1, 1], [], []>} : vector<16x384xbf16>, vector<384x128xbf16>, vector<16x128xf32> -> vector<16x128xf32>
    %c0_15 = arith.constant 0 : index
    %c0_16 = arith.constant 0 : index
    %20 = vector.load %arg7[%c0_15, %c0_16] : memref<1x128xf32, #tpu.memory_space<vmem>>, vector<1x128xf32>
    %21 = vector.broadcast %20 : vector<1x128xf32> to vector<16x128xf32>
    %22 = arith.addf %19, %21 : vector<16x128xf32>
    %23 = arith.truncf %22 : vector<16x128xf32> to vector<16x128xbf16>
    %c0_17 = arith.constant 0 : index
    %c0_18 = arith.constant 0 : index
    %24 = vector.load %arg8[%c0_17, %c0_18] : memref<16x128xbf16, #tpu.memory_space<vmem>>, vector<16x128xbf16>
    tpu.vector_store %arg8[%c0_17, %c0_18], %23 {strides = array<i32>} : memref<16x128xbf16, #tpu.memory_space<vmem>>, vector<16x128xbf16>,
    return
  }
  func.func @transform_0(%arg0: i32) -> (i32, i32) {
    %c0_i32 = arith.constant 0 : i32
    %c0_i32_0 = arith.constant 0 : i32
    return %arg0, %c0_i32 : i32, i32
  }
  func.func @transform_1(%arg0: i32) -> (i32, i32) {
    %c0_i32 = arith.constant 0 : i32
    %c0_i32_0 = arith.constant 0 : i32
    %c0_i32_1 = arith.constant 0 : i32
    return %c0_i32, %c0_i32_0 : i32, i32
  }
  func.func @transform_2(%arg0: i32) -> (i32, i32) {
    %c0_i32 = arith.constant 0 : i32
    %c0_i32_0 = arith.constant 0 : i32
    %c0_i32_1 = arith.constant 0 : i32
    return %c0_i32, %c0_i32_0 : i32, i32
  }
  func.func @transform_3(%arg0: i32) -> (i32, i32) {
    %c0_i32 = arith.constant 0 : i32
    %c0_i32_0 = arith.constant 0 : i32
    %c0_i32_1 = arith.constant 0 : i32
    return %c0_i32, %c0_i32_0 : i32, i32
  }
  func.func @transform_4(%arg0: i32) -> (i32, i32) {
    %c0_i32 = arith.constant 0 : i32
    %c0_i32_0 = arith.constant 0 : i32
    %c0_i32_1 = arith.constant 0 : i32
    return %c0_i32, %c0_i32_0 : i32, i32
  }
  func.func @transform_5(%arg0: i32) -> (i32, i32) {
    %c0_i32 = arith.constant 0 : i32
    %c0_i32_0 = arith.constant 0 : i32
    %c0_i32_1 = arith.constant 0 : i32
    return %c0_i32, %c0_i32_0 : i32, i32
  }
  func.func @transform_6(%arg0: i32) -> (i32, i32) {
    %c0_i32 = arith.constant 0 : i32
    %c0_i32_0 = arith.constant 0 : i32
    %c0_i32_1 = arith.constant 0 : i32
    return %c0_i32, %c0_i32_0 : i32, i32
  }
  func.func @transform_7(%arg0: i32) -> (i32, i32) {
    %c0_i32 = arith.constant 0 : i32
    %c0_i32_0 = arith.constant 0 : i32
    return %arg0, %c0_i32 : i32, i32
  }
}

</mosaic_0001>

<bundles_post_ra>
// kernel: tpu_custom_call.1
= control target key start
LH: loop header
LB: loop body
LE: loop exit
PB: predicated region body
PF: predicated region fallthrough
CT: control target
= control target key end

     0   :  { %12 = vsyncpa [#allocation3], 0  ;;  %s2597_s0 = inlined_call_operand.hbm [shape: f32[16,350], index: 0, kind: input, shape index: {}]   ;;  %s2598_s1 = inlined_call_operand.hbm [shape: bf16[350,384], index: 1, kind: input, shape index: {}]   ;;  %s2599_s2 = inlined_call_operand.vmem [shape: f32[1,384], index: 2, kind: input, shape index: {}]   ;;  %s2600_s3 = inlined_call_operand.hbm [shape: bf16[384,384], index: 3, kind: input, shape index: {}]   ;;  %s2601_s4 = inlined_call_operand.vmem [shape: f32[1,384], index: 4, kind: input, shape index: {}]   ;;  %s2602_s5 = inlined_call_operand.hbm [shape: bf16[384,128], index: 5, kind: input, shape index: {}]   ;;  %s2603_s6 = inlined_call_operand.vmem [shape: f32[1,128], index: 6, kind: input, shape index: {}]   ;;  %s2604_s7 = inlined_call_operand.hbm [shape: bf16[16,128], index: 7, kind: output, shape index: {}]  }
   0x1   :  { %13 = vsyncpa [#allocation6], 0 }
   0x2   :  { %14 = vsyncpa [#allocation9], 0 }
   0x3   :  { %15 = vsyncpa [#allocation4], 0  ;;  %s2399_s24 = smov [#allocation5]   ;;  %s2281_s28 = scalar_lea.hbm %s2598_s1, 8448 }
   0x4   :  { %s33_s25 = sshll.u32 %s2399_s24, 4  ;;  %p2282_p0 = scmp.ne.s32.totalorder %s2598_s1, %s2281_s28  ;;  %s34_s25 = int_to_ptr.vmem [resolvable:$true] %s33_s25 }
   0x5   :  { %p2285_p1 = scmp.lt.u32.totalorder %s2281_s28, %s2598_s1 }
   0x7   :  { %p2287_p2 = pnand %p2285_p1, %p2282_p0 }
   0x9   :  { %2290 = shalt.err (!%p2287_p2)
}
   0xa   :  { %s2291_s10 = scalar_lea.vmem %s34_s25, 8448  ;;  %p2296_p4 = scmp.lt.s32.totalorder %s34_s25, %s34_s25 }
   0xb   :  { %p2292_p3 = scmp.ne.s32.totalorder %s34_s25, %s2291_s10  ;;  %p2297_p5 = scmp.lt.s32.totalorder %s2291_s10, %s2291_s10 }
   0xd   :  { %p2298_p6 = por %p2297_p5, %p2296_p4 }
   0xf   :  { %p2299_p7 = pnand %p2298_p6, %p2292_p3 }
  0x11   :  { %2302 = shalt.err (!%p2299_p7)
}
  0x12   :  { %s2400_s11 = smov 192   ;;  %s2401_s12 = smov 12  }
  0x13   :  { %39 = dma.hbm_to_vmem [thread:$0]  %s2598_s1, 8448, %s34_s25, [#allocation6], %s2400_s11, %s2400_s11, %s2401_s12  }
  0x14   :  { %s2402_s15 = smov [#allocation2]   ;;  %s2303_s19 = scalar_lea.hbm %s2597_s0, 768 }
  0x15   :  { %s21_s16 = sshll.u32 %s2402_s15, 4  ;;  %p2304_p8 = scmp.ne.s32.totalorder %s2597_s0, %s2303_s19  ;;  %s22_s16 = int_to_ptr.vmem [resolvable:$true] %s21_s16 }
  0x16   :  { %p2307_p9 = scmp.lt.u32.totalorder %s2303_s19, %s2597_s0 }
  0x18   :  { %p2309_p10 = pnand %p2307_p9, %p2304_p8 }
  0x1a   :  { %2312 = shalt.err (!%p2309_p10)
}
  0x1b   :  { %s2313_s24 = scalar_lea.vmem %s22_s16, 768  ;;  %p2318_p12 = scmp.lt.s32.totalorder %s22_s16, %s22_s16 }
  0x1c   :  { %p2314_p11 = scmp.ne.s32.totalorder %s22_s16, %s2313_s24  ;;  %p2319_p13 = scmp.lt.s32.totalorder %s2313_s24, %s2313_s24 }
  0x1e   :  { %p2320_p0 = por %p2319_p13, %p2318_p12 }
  0x20   :  { %p2321_p1 = pnand %p2320_p0, %p2314_p11 }
  0x22   :  { %2324 = shalt.err (!%p2321_p1)
}
  0x23   :  { %s2403_s1 = smov 384   ;;  %s2404_s25 = smov 24  }
  0x24   :  { %27 = dma.hbm_to_vmem [thread:$0]  %s2597_s0, 768, %s22_s16, [#allocation3], %s2403_s1, %s2403_s1, %s2404_s25  }
  0x25   :  { %s2405_s28 = smov [#allocation7]   ;;  %s2406_s30 = smov [#allocation8]  }
  0x26   :  { %s47_s29 = sshll.u32 %s2405_s28, 4  ;;  %s61_s8 = sshll.u32 %s2406_s30, 4  ;;  %s48_s29 = int_to_ptr.vmem [resolvable:$true] %s47_s29  ;;  %s2480_s8 = int_to_ptr.vmem [resolvable:$true] %s61_s8 }
  0x27   :  { %s2325_s13 = scalar_lea.hbm %s2600_s3, 9216 }
  0x28   :  { %p2326_p2 = scmp.ne.s32.totalorder %s2600_s3, %s2325_s13  ;;  %p2329_p3 = scmp.lt.u32.totalorder %s2325_s13, %s2600_s3 }
  0x2a   :  { %p2331_p4 = pnand %p2329_p3, %p2326_p2 }
  0x2c   :  { %2334 = shalt.err (!%p2331_p4)
}
  0x2d   :  { %s2335_s0 = scalar_lea.vmem %s48_s29, 9216  ;;  %p2340_p6 = scmp.lt.s32.totalorder %s48_s29, %s48_s29 }
  0x2e   :  { %p2336_p5 = scmp.ne.s32.totalorder %s48_s29, %s2335_s0  ;;  %p2341_p7 = scmp.lt.s32.totalorder %s2335_s0, %s2335_s0 }
  0x30   :  { %p2342_p8 = por %p2341_p7, %p2340_p6 }
  0x32   :  { %p2343_p9 = pnand %p2342_p8, %p2336_p5 }
  0x34   :  { %2346 = shalt.err (!%p2343_p9)
}
  0x35   :  { %53 = dma.hbm_to_vmem [thread:$0]  %s2600_s3, 9216, %s48_s29, [#allocation6], %s2400_s11, %s2400_s11, %s2401_s12  }
  0x36   :  { %s2347_s22 = scalar_lea.hbm %s2602_s5, 3072 }
  0x37   :  { %p2348_p10 = scmp.ne.s32.totalorder %s2602_s5, %s2347_s22  ;;  %p2351_p11 = scmp.lt.u32.totalorder %s2347_s22, %s2602_s5 }
  0x39   :  { %p2353_p12 = pnand %p2351_p11, %p2348_p10 }
  0x3b   :  { %2356 = shalt.err (!%p2353_p12)
}
  0x3c   :  { %s2357_s26 = scalar_lea.vmem %s2480_s8, 3072  ;;  %p2362_p0 = scmp.lt.s32.totalorder %s2480_s8, %s2480_s8 }
  0x3d   :  { %p2358_p13 = scmp.ne.s32.totalorder %s2480_s8, %s2357_s26  ;;  %p2363_p1 = scmp.lt.s32.totalorder %s2357_s26, %s2357_s26 }
  0x3f   :  { %p2364_p2 = por %p2363_p1, %p2362_p0 }
  0x41   :  { %p2365_p3 = pnand %p2364_p2, %p2358_p13 }
  0x43   :  { %2368 = shalt.err (!%p2365_p3)
}
  0x44   :  { %s2407_s3 = smov 64   ;;  %s2408_s11 = smov 4  }
  0x45   :  { %67 = dma.hbm_to_vmem [thread:$0]  %s2602_s5, 3072, %s2480_s8, [#allocation9], %s2407_s3, %s2407_s3, %s2408_s11  }
  0x46   :  { %2391 = dma.done.wait [#allocation3], 768  }
  0x47   :  { %2392 = vsyncadd [#allocation3], 4294966528 }
  0x48   :  { %2393 = dma.done.wait [#allocation6], 17664  }
  0x49   :  { %2394 = vsyncadd [#allocation6], 4294949632 }
  0x4a   :  { %2395 = dma.done.wait [#allocation9], 3072  }
  0x4b   :  { %2396 = vsyncadd [#allocation9], 4294964224  ;;  %v2073_v0 = vld [vmem:[#allocation5 + $0x4] ss:$12 sps:$4 sm:$0xff]   ;;  %v2075_v1 = vld [vmem:[#allocation5] ss:$12 sps:$4 sm:$0xff]  }
  0x4c   :  { %560 = vmatprep.subr.bf16.mxu0 %v2073_v0  ;;  %v2076_v2 = vld [vmem:[#allocation5 + $0x1c] ss:$12 sps:$4 sm:$0xff]   ;;  %v2078_v3 = vld [vmem:[#allocation5 + $0x18] ss:$12 sps:$4 sm:$0xff]   ;;  %v2079_v4 = vld [vmem:[#allocation5 + $0x34] ss:$12 sps:$4 sm:$0xff]  }
  0x4d   :  { %561 = vmatpush1.bf16.msra.mxu0 %v2075_v1  ;;  %v2081_v5 = vld [vmem:[#allocation5 + $0x30] ss:$12 sps:$4 sm:$0xff]   ;;  %v2082_v6 = vld [vmem:[#allocation5 + $0x4c] ss:$12 sps:$4 sm:$0xff]   ;;  %v2084_v7 = vld [vmem:[#allocation5 + $0x48] ss:$12 sps:$4 sm:$0xff]  }
  0x4e   :  { %562 = vmatprep.subr.bf16.mxu0 %v2076_v2  ;;  %v2085_v8 = vld [vmem:[#allocation5 + $0x64] ss:$12 sps:$4 sm:$0xff]   ;;  %v2087_v9 = vld [vmem:[#allocation5 + $0x60] ss:$12 sps:$4 sm:$0xff]   ;;  %v2088_v10 = vld [vmem:[#allocation5 + $0x7c] ss:$12 sps:$4 sm:$0xff]  }
  0x4f   :  { %v2108_v11 = vld [vmem:[#allocation5 + $0xc8] ss:$12 sps:$4 sm:$0xff]   ;;  %v2090_v13 = vld [vmem:[#allocation5 + $0x78] ss:$12 sps:$4 sm:$0xff]   ;;  %v2113_v14 = vld [vmem:[#allocation5 + $0xe0] ss:$12 sps:$4 sm:$0xff]  }
  0x50   :  { %v2110_v12 = vld [vmem:[#allocation5 + $0x8] ss:$12 sps:$4 sm:$0xff]   ;;  %1896 = vmatprep.subr.bf16.mxu1 %v2108_v11  ;;  %v2115_v16 = vld [vmem:[#allocation5 + $0x20] ss:$12 sps:$4 sm:$0xff]   ;;  %v2093_v17 = vld [vmem:[#allocation5 + $0x90] ss:$12 sps:$4 sm:$0xff]  }
  0x51   :  { %563 = vmatpush1.bf16.msra.mxu0 %v2078_v3  ;;  %1897 = vmatpush3.bf16.msra.mxu1 %v2110_v12  ;;  %v2091_v15 = vld [vmem:[#allocation5 + $0x94] ss:$12 sps:$4 sm:$0xff]   ;;  %v2094_v18 = vld [vmem:[#allocation5 + $0xac] ss:$12 sps:$4 sm:$0xff]   ;;  %v2123_v22 = vld [vmem:[#allocation5 + $0x110] ss:$12 sps:$4 sm:$0xff]  }
  0x52   :  { %564 = vmatprep.subr.bf16.mxu0 %v2079_v4  ;;  %1898 = vmatprep.subr.bf16.mxu1 %v2113_v14  ;;  %v2118_v19 = vld [vmem:[#allocation5 + $0xf8] ss:$12 sps:$4 sm:$0xff]   ;;  %v2096_v21 = vld [vmem:[#allocation5 + $0xa8] ss:$12 sps:$4 sm:$0xff]   ;;  %v2125_v23 = vld [vmem:[#allocation5 + $0x50] ss:$12 sps:$4 sm:$0xff]  }
  0x53   :  { %v2120_v20 = vld [vmem:[#allocation5 + $0x38] ss:$12 sps:$4 sm:$0xff]   ;;  %v2128_v25 = vld [vmem:[#allocation5 + $0x128] ss:$12 sps:$4 sm:$0xff]   ;;  %v2099_v26 = vld [vmem:[#allocation5 + $0xc0] ss:$12 sps:$4 sm:$0xff]  }
  0x54   :  { %v2097_v24 = vld [vmem:[#allocation5 + $0xc4] ss:$12 sps:$4 sm:$0xff]   ;;  %v2130_v27 = vld [vmem:[#allocation5 + $0x68] ss:$12 sps:$4 sm:$0xff]   ;;  %v84_v28 = vld [vmem:[#allocation2 + $0x8] sm:$0xff]  ;;  %v2409_v50 = vmov 0.0  }
  0x55   :  { %565 = vmatpush1.bf16.msra.mxu0 %v2081_v5  ;;  %1899 = vmatpush3.bf16.msra.mxu1 %v2115_v16  ;;  %v87_v29 = vld [vmem:[#allocation2 + $0x20] sm:$0xff]  ;;  %v2100_v30 = vld [vmem:[#allocation5 + $0xdc] ss:$12 sps:$4 sm:$0xff]   ;;  %v2102_v32 = vld [vmem:[#allocation5 + $0xd8] ss:$12 sps:$4 sm:$0xff]   ;;  %vm2410_vm0 = vmmov 0  }
  0x56   :  { %566 = vmatprep.subr.bf16.mxu0 %v2082_v6  ;;  %1900 = vmatprep.subr.bf16.mxu1 %v2118_v19  ;;  %v90_v31 = vpack.c.bf16 %v87_v29, %v84_v28  ;;  %v2134_v33 = vld [vmem:[#allocation5 + $0x140] ss:$12 sps:$4 sm:$0xff]   ;;  %v2105_v36 = vld [vmem:[#allocation5 + $0xf0] ss:$12 sps:$4 sm:$0xff]   ;;  %v2139_v37 = vld [vmem:[#allocation5 + $0x158] ss:$12 sps:$4 sm:$0xff]  }
  0x57   :  { %v2135_v34 = vld [vmem:[#allocation5 + $0x80] ss:$12 sps:$4 sm:$0xff]   ;;  %v2140_v38 = vld [vmem:[#allocation5 + $0x98] ss:$12 sps:$4 sm:$0xff]   ;;  %v2144_v40 = vld [vmem:[#allocation5 + $0x170] ss:$12 sps:$4 sm:$0xff]  }
  0x58   :  { %592 = vmatprep.mubr.bf16.mxu0 %v90_v31  ;;  %678 = vmatprep.mubr.bf16.mxu1 %v90_v31  ;;  %v2103_v35 = vld [vmem:[#allocation5 + $0xf4] ss:$12 sps:$4 sm:$0xff]   ;;  %v2106_v39 = vld [vmem:[#allocation5 + $0x10c] ss:$12 sps:$4 sm:$0xff]   ;;  %v2111_v42 = vld [vmem:[#allocation5 + $0x124] ss:$12 sps:$4 sm:$0xff]  }
  0x59   :  { %567 = vmatpush1.bf16.msra.mxu0 %v2084_v7  ;;  %1901 = vmatpush3.bf16.msra.mxu1 %v2120_v20  ;;  %v2109_v41 = vld [vmem:[#allocation5 + $0x108] ss:$12 sps:$4 sm:$0xff]   ;;  %v2145_v43 = vld [vmem:[#allocation5 + $0xb0] ss:$12 sps:$4 sm:$0xff]   ;;  %v2114_v46 = vld [vmem:[#allocation5 + $0x120] ss:$12 sps:$4 sm:$0xff]  }
  0x5a   :  { %568 = vmatprep.subr.bf16.mxu0 %v2085_v8  ;;  %1902 = vmatprep.subr.bf16.mxu1 %v2123_v22  ;;  %v83_v44 = vld [vmem:[#allocation2] sm:$0xff]  ;;  %v86_v45 = vld [vmem:[#allocation2 + $0x18] sm:$0xff]  ;;  %v2119_v51 = vld [vmem:[#allocation5 + $0x138] ss:$12 sps:$4 sm:$0xff]   ;;  %v2411_v1 = vmov 0   ;;  %vm550_vm1 = vcmask 1046528  }
  0x5b   :  { %v2149_v47 = vld [vmem:[#allocation5 + $0x188] ss:$12 sps:$4 sm:$0xff]   ;;  %v89_v49 = vpack.c.bf16 %v86_v45, %v83_v44  ;;  %v2153_v52 = vld [vmem:[#allocation5 + $0x1a0] ss:$12 sps:$4 sm:$0xff]   ;;  %v2124_v54 = vld [vmem:[#allocation5 + $0x150] ss:$12 sps:$4 sm:$0xff]  }
  0x5c   :  { %v2116_v48 = vld [vmem:[#allocation5 + $0x13c] ss:$12 sps:$4 sm:$0xff]   ;;  %v2121_v53 = vld [vmem:[#allocation5 + $0x154] ss:$12 sps:$4 sm:$0xff]   ;;  %v2157_v55 = vld [vmem:[#allocation5 + $0x1b8] ss:$12 sps:$4 sm:$0xff]  }
  0x5d   :  { %569 = vmatpush1.bf16.msra.mxu0 %v2087_v9  ;;  %1903 = vmatpush3.bf16.msra.mxu1 %v2125_v23  ;;  %v2126_v56 = vld [vmem:[#allocation5 + $0x16c] ss:$12 sps:$4 sm:$0xff]   ;;  %v2129_v57 = vld [vmem:[#allocation5 + $0x168] ss:$12 sps:$4 sm:$0xff]   ;;  %v2158_v58 = vld [vmem:[#allocation5 + $0x1d0] ss:$12 sps:$4 sm:$0xff]  }
  0x5e   :  { %570 = vmatprep.subr.bf16.mxu0 %v2088_v10  ;;  %1904 = vmatprep.subr.bf16.mxu1 %v2128_v25  ;;  %v2133_v59 = vld [vmem:[#allocation5 + $0x184] ss:$12 sps:$4 sm:$0xff]   ;;  %v2131_v60 = vld [vmem:[#allocation5 + $0x180] ss:$12 sps:$4 sm:$0xff]   ;;  %v2138_v61 = vld [vmem:[#allocation5 + $0x19c] ss:$12 sps:$4 sm:$0xff]  }
  0x5f   :  { %v2159_v62 = vld [vmem:[#allocation5 + $0x1e8] ss:$12 sps:$4 sm:$0xff]   ;;  %v2160_v63 = vld [vmem:[#allocation5 + $0x200] ss:$12 sps:$4 sm:$0x7f]   ;;  %v88_v7 = vld [vmem:[#allocation2 + $0x28] sm:$0xff] }
  0x60   :  { %v2136_v0 = vld [vmem:[#allocation5 + $0x198] ss:$12 sps:$4 sm:$0xff]   ;;  %v2143_v2 = vld [vmem:[#allocation5 + $0x1b4] ss:$12 sps:$4 sm:$0xff]   ;;  %v2141_v4 = vld [vmem:[#allocation5 + $0x1b0] ss:$12 sps:$4 sm:$0xff]  }
  0x61   :  { %571 = vmatpush1.bf16.msra.mxu0 %v2090_v13  ;;  %1905 = vmatpush3.bf16.msra.mxu1 %v2130_v27  ;;  %v2163_v3 = vld [vmem:[#allocation7 + $0x4] ss:$12 sps:$4 sm:$0xff]   ;;  %v558_v6 = vsel %vm550_vm1, %v2160_v63, 0  ;;  %v2148_v8 = vld [vmem:[#allocation5 + $0x1cc] ss:$12 sps:$4 sm:$0xff]   ;;  %vm546_vm2 = vcmask 769024  }
  0x62   :  { %572 = vmatprep.subr.bf16.mxu0 %v2091_v15  ;;  %1906 = vmatprep.subr.bf16.mxu1 %v2134_v33  ;;  %v85_v5 = vld [vmem:[#allocation2 + $0x10] sm:$0xff]  ;;  %v2161_v9 = vld [vmem:[#allocation7] ss:$12 sps:$4 sm:$0xff]   ;;  %v2166_v11 = vld [vmem:[#allocation7 + $0x1c] ss:$12 sps:$4 sm:$0xff]   ;;  %s2412_s8 = smov [#allocation10]  }
  0x63   :  { %v91_v10 = vpack.c.bf16 %v88_v7, %v85_v5  ;;  %v2146_v12 = vld [vmem:[#allocation5 + $0x1c8] ss:$12 sps:$4 sm:$0xff]   ;;  %v2152_v13 = vld [vmem:[#allocation5 + $0x1e4] ss:$12 sps:$4 sm:$0xff]   ;;  %v2167_v19 = vld [vmem:[#allocation7 + $0x30] ss:$12 sps:$4 sm:$0xff]  }
  0x64   :  { %v2164_v14 = vld [vmem:[#allocation7 + $0x18] ss:$12 sps:$4 sm:$0xff]   ;;  %v2169_v15 = vld [vmem:[#allocation7 + $0x34] ss:$12 sps:$4 sm:$0xff]   ;;  %v2178_v28 = vld [vmem:[#allocation7 + $0x7c] ss:$12 sps:$4 sm:$0xff]  }
  0x65   :  { %573 = vmatpush1.bf16.msra.mxu0 %v2093_v17  ;;  %1907 = vmatpush3.bf16.msra.mxu1 %v2135_v34  ;;  %v2154_v16 = vld [vmem:[#allocation5 + $0x1fc] ss:$12 sps:$4 sm:$0x7f]   ;;  %v2156_v17 = vld [vmem:[#allocation5 + $0x1f8] ss:$12 sps:$4 sm:$0x7f]  }
  0x66   :  { %574 = vmatprep.subr.bf16.mxu0 %v2094_v18  ;;  %1908 = vmatprep.subr.bf16.mxu1 %v2139_v37  ;;  %v2150_v18 = vld [vmem:[#allocation5 + $0x1e0] ss:$12 sps:$4 sm:$0xff]   ;;  %v2172_v20 = vld [vmem:[#allocation7 + $0x4c] ss:$12 sps:$4 sm:$0xff]   ;;  %v552_v22 = vsel %vm550_vm1, %v2156_v17, 0  ;;  %s1707_s9 = sshll.u32 %s2412_s8, 4  ;;  %s1708_s9 = int_to_ptr.vmem [resolvable:$true] %s1707_s9 }
  0x67   :  { %v2175_v23 = vld [vmem:[#allocation7 + $0x64] ss:$12 sps:$4 sm:$0xff]   ;;  %v2189_v25 = vld [vmem:[#allocation7 + $0x8] ss:$12 sps:$4 sm:$0xff]   ;;  %v2193_v27 = vld [vmem:[#allocation7 + $0xe0] ss:$12 sps:$4 sm:$0xff]   ;;  %p2374_p5 = scmp.lt.s32.totalorder %s1708_s9, %s1708_s9 }
  0x68   :  { %v2194_v29 = vld [vmem:[#allocation7 + $0x20] ss:$12 sps:$4 sm:$0xff]   ;;  %v2198_v31 = vld [vmem:[#allocation7 + $0xf8] ss:$12 sps:$4 sm:$0xff]   ;;  %v2179_v34 = vld [vmem:[#allocation7 + $0x90] ss:$12 sps:$4 sm:$0xff]  }
  0x69   :  { %575 = vmatpush1.bf16.msra.mxu0 %v2096_v21  ;;  %1909 = vmatpush3.bf16.msra.mxu1 %v2140_v38  ;;  %v2170_v21 = vld [vmem:[#allocation7 + $0x48] ss:$12 sps:$4 sm:$0xff]   ;;  %v2199_v33 = vld [vmem:[#allocation7 + $0x38] ss:$12 sps:$4 sm:$0xff]   ;;  %v2204_v37 = vld [vmem:[#allocation7 + $0x50] ss:$12 sps:$4 sm:$0xff]  }
  0x6a   :  { %576 = vmatprep.subr.bf16.mxu0 %v2097_v24  ;;  %1910 = vmatprep.subr.bf16.mxu1 %v2144_v40  ;;  %v2188_v24 = vld [vmem:[#allocation7 + $0xc8] ss:$12 sps:$4 sm:$0xff]   ;;  %v2187_v40 = vld [vmem:[#allocation7 + $0xc4] ss:$12 sps:$4 sm:$0xff]   ;;  %v2214_v45 = vld [vmem:[#allocation7 + $0x80] ss:$12 sps:$4 sm:$0xff]  }
  0x6b   :  { %v2182_v38 = vld [vmem:[#allocation7 + $0xa8] ss:$12 sps:$4 sm:$0xff]   ;;  %v2224_v63 = vld [vmem:[#allocation7 + $0xb0] ss:$12 sps:$4 sm:$0xff]   ;;  %s2369_s10 = scalar_lea.vmem %s1708_s9, 128 }
  0x6c   :  { %v2192_v44 = vld [vmem:[#allocation7 + $0xdc] ss:$12 sps:$4 sm:$0xff]   ;;  %p2370_p4 = scmp.ne.s32.totalorder %s1708_s9, %s2369_s10  ;;  %p2375_p6 = scmp.lt.s32.totalorder %s2369_s10, %s2369_s10 }
  0x6d   :  { %577 = vmatpush1.bf16.msra.mxu0 %v2099_v26  ;;  %1911 = vmatpush3.bf16.msra.mxu1 %v2145_v43  ;;  %v2173_v26 = vld [vmem:[#allocation7 + $0x60] ss:$12 sps:$4 sm:$0xff]  }
  0x6e   :  { %578 = vmatprep.subr.bf16.mxu0 %v2100_v30  ;;  %1987 = vmatprep.subr.bf16.mxu1 %v2409_v50  ;;  %v2176_v30 = vld [vmem:[#allocation7 + $0x78] ss:$12 sps:$4 sm:$0xff]   ;;  %v2213_v43 = vld [vmem:[#allocation7 + $0x140] ss:$12 sps:$4 sm:$0xff]   ;;  %p2376_p7 = por %p2375_p6, %p2374_p5 }
  0x70   :  { %679 = vmatmul.mubr.bf16.vlgmr.msra.gmra.mrb[0].mxu1 %v89_v49  ;;  %p2377_p8 = pnand %p2376_p7, %p2370_p4 }
  0x71   :  { %579 = vmatpush1.bf16.msra.mxu0 %v2102_v32  ;;  %1988 = vmatpush3.bf16.msra.mxu1 %v2149_v47  ;;  %v2181_v32 = vld [vmem:[#allocation7 + $0x94] ss:$12 sps:$4 sm:$0xff]  }
  0x72   :  { %580 = vmatprep.subr.bf16.mxu0 %v2103_v35  ;;  %1989 = vmatprep.subr.bf16.mxu1 %v2409_v50  ;;  %v2203_v35 = vld [vmem:[#allocation7 + $0x110] ss:$12 sps:$4 sm:$0xff]   ;;  %v2197_v47 = vld [vmem:[#allocation7 + $0xf4] ss:$12 sps:$4 sm:$0xff]  }
  0x73   :  { %1999 = vmatprep.mubr.msk.bf16.mxu1 %vm2410_vm0, %v2409_v50 }
  0x75   :  { %581 = vmatpush1.bf16.msra.mxu0 %v2105_v36  ;;  %1990 = vmatpush3.bf16.msra.mxu1 %v2153_v52  ;;  %v2184_v36 = vld [vmem:[#allocation7 + $0xac] ss:$12 sps:$4 sm:$0xff]   ;;  %v2207_v52 = vld [vmem:[#allocation7 + $0x124] ss:$12 sps:$4 sm:$0xff]  }
  0x76   :  { %582 = vmatprep.subr.bf16.mxu0 %v2106_v39  ;;  %1991 = vmatprep.subr.bf16.mxu1 %v2409_v50  ;;  %v2208_v39 = vld [vmem:[#allocation7 + $0x128] ss:$12 sps:$4 sm:$0xff]  }
  0x79   :  { %583 = vmatpush1.bf16.msra.mxu0 %v2109_v41  ;;  %1992 = vmatpush3.bf16.msra.mxu1 %v2157_v55  ;;  %v2209_v41 = vld [vmem:[#allocation7 + $0x68] ss:$12 sps:$4 sm:$0xff]   ;;  %v2210_v55 = vld [vmem:[#allocation7 + $0x138] ss:$12 sps:$4 sm:$0xff]  }
  0x7a   :  { %584 = vmatprep.subr.bf16.mxu0 %v2111_v42  ;;  %1993 = vmatprep.subr.bf16.mxu1 %v2409_v50  ;;  %v2185_v42 = vld [vmem:[#allocation7 + $0xc0] ss:$12 sps:$4 sm:$0xff]  }
  0x7d   :  { %585 = vmatpush1.bf16.msra.mxu0 %v2114_v46  ;;  %1994 = vmatpush3.bf16.msra.mxu1 %v2158_v58  ;;  %v2190_v46 = vld [vmem:[#allocation7 + $0xd8] ss:$12 sps:$4 sm:$0xff]   ;;  %v2215_v58 = vld [vmem:[#allocation7 + $0x150] ss:$12 sps:$4 sm:$0xff]  }
  0x7e   :  { %586 = vmatprep.subr.bf16.mxu0 %v2116_v48  ;;  %1995 = vmatprep.subr.bf16.mxu1 %v2409_v50  ;;  %v2195_v48 = vld [vmem:[#allocation7 + $0xf0] ss:$12 sps:$4 sm:$0xff]  }
  0x81   :  { %587 = vmatpush1.bf16.msra.mxu0 %v2119_v51  ;;  %1996 = vmatpush3.bf16.msra.mxu1 %v2159_v62  ;;  %v2200_v51 = vld [vmem:[#allocation7 + $0x108] ss:$12 sps:$4 sm:$0xff]  }
  0x82   :  { %588 = vmatprep.subr.bf16.mxu0 %v2121_v53  ;;  %1997 = vmatprep.subr.bf16.mxu1 %v2409_v50  ;;  %v2205_v53 = vld [vmem:[#allocation7 + $0x120] ss:$12 sps:$4 sm:$0xff]   ;;  %v2220_v62 = vld [vmem:[#allocation7 + $0x168] ss:$12 sps:$4 sm:$0xff]  }
  0x85   :  { %589 = vmatpush1.bf16.msra.mxu0 %v2124_v54  ;;  %1998 = vmatpush3.bf16.msra.mxu1 %v558_v6  ;;  %v2212_v54 = vld [vmem:[#allocation7 + $0x13c] ss:$12 sps:$4 sm:$0xff]  }
  0x86   :  { %590 = vmatprep.subr.bf16.mxu0 %v2126_v56  ;;  %1234 = vmatprep.subr.bf16.mxu1 %v2163_v3  ;;  %v2217_v56 = vld [vmem:[#allocation7 + $0x154] ss:$12 sps:$4 sm:$0xff]  }
  0x88   :  { %2000 = vmatmul.mubr.msk.bf16.vlgmr.msra.gmra.mrb[4].mxu1 %vm546_vm2, %v91_v10 }
  0x89   :  { %591 = vmatpush1.bf16.msra.mxu0 %v2129_v57  ;;  %1235 = vmatpush1.bf16.msra.mxu1 %v2161_v9  ;;  %v2218_v57 = vld [vmem:[#allocation7 + $0x158] ss:$12 sps:$4 sm:$0xff]  }
  0x8a   :  { %603 = vmatprep.subr.bf16.mxu0 %v2133_v59  ;;  %1236 = vmatprep.subr.bf16.mxu1 %v2166_v11  ;;  %v2219_v59 = vld [vmem:[#allocation7 + $0x98] ss:$12 sps:$4 sm:$0xff]   ;;  %v180_v11 = vld [vmem:[%s2599_s2] sm:$0x7] }
  0x8c   :  { %593 = vmatmul.mubr.bf16.vlgmr.msra.gmra.mrb[0].mxu0 %v89_v49  ;;  %v2202_v49 = vld [vmem:[#allocation7 + $0x10c] ss:$12 sps:$4 sm:$0xff]  }
  0x8d   :  { %604 = vmatpush1.bf16.msra.mxu0 %v2131_v60  ;;  %635 = vmatprep.mubr.bf16.mxu0 %v2411_v1  ;;  %v2222_v60 = vld [vmem:[#allocation7 + $0x16c] ss:$12 sps:$4 sm:$0xff]  }
  0x8e   :  { %605 = vmatprep.subr.bf16.mxu0 %v2138_v61  ;;  %1237 = vmatpush1.bf16.msra.mxu1 %v2164_v14  ;;  %v2223_v61 = vld [vmem:[#allocation7 + $0x170] ss:$12 sps:$4 sm:$0xff]  }
  0x8f   :  { %1238 = vmatprep.subr.bf16.mxu1 %v2169_v15 }
  0x91   :  { %606 = vmatpush1.bf16.msra.mxu0 %v2136_v0  ;;  %v2227_v0 = vld [vmem:[#allocation7 + $0x184] ss:$12 sps:$4 sm:$0xff]  }
  0x92   :  { %607 = vmatprep.subr.bf16.mxu0 %v2143_v2  ;;  %1239 = vmatpush1.bf16.msra.mxu1 %v2167_v19 }
  0x93   :  { %1240 = vmatprep.subr.bf16.mxu1 %v2172_v20 }
  0x95   :  { %608 = vmatpush1.bf16.msra.mxu0 %v2141_v4 }
  0x96   :  { %609 = vmatprep.subr.bf16.mxu0 %v2148_v8  ;;  %1241 = vmatpush1.bf16.msra.mxu1 %v2170_v21  ;;  %v182_v8 = vlaneseq }
  0x97   :  { %1242 = vmatprep.subr.bf16.mxu1 %v2175_v23 }
  0x98   :  { %v2532_v9 = vshrl.u32 %v182_v8, 7  ;;  %v2264_v8 = vld [vmem:[#allocation8 + $0x50] sm:$0xff]  }
  0x99   :  { %610 = vmatpush1.bf16.msra.mxu0 %v2146_v12 }
  0x9a   :  { %611 = vmatprep.subr.bf16.mxu0 %v2152_v13  ;;  %1243 = vmatpush1.bf16.msra.mxu1 %v2173_v26 }
  0x9b   :  { %1244 = vmatprep.subr.bf16.mxu1 %v2178_v28 }
  0x9d   :  { %612 = vmatpush1.bf16.msra.mxu0 %v2150_v18 }
  0x9e   :  { %1787 = vmatprep.subr.msk.bf16.mxu0 %vm550_vm1, %v2154_v16  ;;  %1245 = vmatpush1.bf16.msra.mxu1 %v2176_v30 }
  0x9f   :  { %1246 = vmatprep.subr.bf16.mxu1 %v2181_v32 }
  0xa1   :  { %614 = vmatpush1.bf16.msra.mxu0 %v552_v22 }
  0xa2   :  { %1925 = vmatprep.subr.bf16.mxu0 %v2188_v24  ;;  %1247 = vmatpush1.bf16.msra.mxu1 %v2179_v34  ;;  %v184_v24 = vsub.s32 0, %v2532_v9 }
  0xa3   :  { %1248 = vmatprep.subr.bf16.mxu1 %v2184_v36 }
  0xa4   :  { %1788 = vmatmul.mubr.msk.bf16.vlgmr.msra.gmra.mrb[0].mxu0 %vm546_vm2, %v91_v10  ;;  %v192_v10 = vsub.s32 2, %v2532_v9  ;;  %v185_v26 = vrot.slane %v180_v11, %v184_v24 }
  0xa5   :  { %1926 = vmatpush3.bf16.msra.mxu0 %v2189_v25  ;;  %v188_v25 = vsub.s32 1, %v2532_v9 }
  0xa6   :  { %1927 = vmatprep.subr.bf16.mxu0 %v2193_v27  ;;  %1249 = vmatpush1.bf16.msra.mxu1 %v2182_v38  ;;  %v193_v12 = vrot.slane %v180_v11, %v192_v10 }
  0xa7   :  { %1250 = vmatprep.subr.bf16.mxu1 %v2187_v40  ;;  %v189_v27 = vrot.slane %v180_v11, %v188_v25  ;;  %v2263_v11 = vld [vmem:[#allocation8 + $0x90] sm:$0xff]  }
  0xa9   :  { %1928 = vmatpush3.bf16.msra.mxu0 %v2194_v29 }
  0xaa   :  { %1929 = vmatprep.subr.bf16.mxu0 %v2198_v31  ;;  %1251 = vmatpush1.bf16.msra.mxu1 %v2185_v42  ;;  %v2225_v42 = vld [vmem:[#allocation7 + $0x180] ss:$12 sps:$4 sm:$0xff]  }
  0xab   :  { %1252 = vmatprep.subr.bf16.mxu1 %v2192_v44  ;;  %v2231_v44 = vld [vmem:[#allocation7 + $0x19c] ss:$12 sps:$4 sm:$0xff]  }
  0xad   :  { %1930 = vmatpush3.bf16.msra.mxu0 %v2199_v33 }
  0xae   :  { %1931 = vmatprep.subr.bf16.mxu0 %v2203_v35  ;;  %1253 = vmatpush1.bf16.msra.mxu1 %v2190_v46  ;;  %v2232_v46 = vld [vmem:[#allocation7 + $0x1a0] ss:$12 sps:$4 sm:$0xff]  }
  0xaf   :  { %1254 = vmatprep.subr.bf16.mxu1 %v2197_v47  ;;  %v2235_v47 = vld [vmem:[#allocation7 + $0x1b4] ss:$12 sps:$4 sm:$0xff]  }
  0xb1   :  { %1932 = vmatpush3.bf16.msra.mxu0 %v2204_v37 }
  0xb2   :  { %1933 = vmatprep.subr.bf16.mxu0 %v2208_v39  ;;  %1255 = vmatpush1.bf16.msra.mxu1 %v2195_v48  ;;  %v2233_v48 = vld [vmem:[#allocation7 + $0x1b0] ss:$12 sps:$4 sm:$0xff]  }
  0xb3   :  { %1256 = vmatprep.subr.bf16.mxu1 %v2202_v49  ;;  %v2236_v49 = vld [vmem:[#allocation7 + $0x1b8] ss:$12 sps:$4 sm:$0xff]  }
  0xb5   :  { %1934 = vmatpush3.bf16.msra.mxu0 %v2209_v41 }
  0xb6   :  { %1935 = vmatprep.subr.bf16.mxu0 %v2213_v43  ;;  %1257 = vmatpush1.bf16.msra.mxu1 %v2200_v51  ;;  %v2228_v43 = vld [vmem:[#allocation7 + $0x188] ss:$12 sps:$4 sm:$0xff]   ;;  %v2239_v51 = vld [vmem:[#allocation7 + $0x1cc] ss:$12 sps:$4 sm:$0xff]  }
  0xb7   :  { %1258 = vmatprep.subr.bf16.mxu1 %v2207_v52  ;;  %v2237_v52 = vld [vmem:[#allocation7 + $0x1c8] ss:$12 sps:$4 sm:$0xff]  }
  0xb9   :  { %1936 = vmatpush3.bf16.msra.mxu0 %v2214_v45  ;;  %v2229_v45 = vld [vmem:[#allocation7 + $0x198] ss:$12 sps:$4 sm:$0xff]  }
  0xba   :  { %1259 = vmatpush1.bf16.msra.mxu1 %v2205_v53  ;;  %1937 = vmatprep.subr.bf16.mxu0 %v2218_v57  ;;  %v2240_v53 = vld [vmem:[#allocation7 + $0x1d0] ss:$12 sps:$4 sm:$0xff]   ;;  %v2245_v57 = vld [vmem:[#allocation7 + $0x1f8] ss:$12 sps:$4 sm:$0xff]  }
  0xbb   :  { %1260 = vmatprep.subr.bf16.mxu1 %v2212_v54  ;;  %v2243_v54 = vld [vmem:[#allocation7 + $0x1e4] ss:$12 sps:$4 sm:$0xff]  }
  0xbd   :  { %1938 = vmatpush3.bf16.msra.mxu0 %v2219_v59  ;;  %v2251_v59 = vld [vmem:[#allocation7 + $0x214] ss:$12 sps:$4 sm:$0xff]  }
  0xbe   :  { %1261 = vmatpush1.bf16.msra.mxu1 %v2210_v55  ;;  %1939 = vmatprep.subr.bf16.mxu0 %v2223_v61  ;;  %v2244_v55 = vld [vmem:[#allocation7 + $0x1e8] ss:$12 sps:$4 sm:$0xff]   ;;  %v2252_v61 = vld [vmem:[#allocation7 + $0x218] ss:$12 sps:$4 sm:$0xff]  }
  0xbf   :  { %1262 = vmatprep.subr.bf16.mxu1 %v2217_v56  ;;  %v2247_v56 = vld [vmem:[#allocation7 + $0x1fc] ss:$12 sps:$4 sm:$0xff]  }
  0xc1   :  { %1940 = vmatpush3.bf16.msra.mxu0 %v2224_v63  ;;  %v2253_v63 = vld [vmem:[#allocation7 + $0x228] ss:$12 sps:$4 sm:$0xff]  }
  0xc2   :  { %1263 = vmatpush1.bf16.msra.mxu1 %v2215_v58  ;;  %2003 = vmatprep.subr.bf16.mxu0 %v2409_v50  ;;  %v2248_v58 = vld [vmem:[#allocation7 + $0x200] ss:$12 sps:$4 sm:$0xff]  }
  0xc3   :  { %1264 = vmatprep.subr.bf16.mxu1 %v2222_v60  ;;  %v2249_v60 = vld [vmem:[#allocation7 + $0x210] ss:$12 sps:$4 sm:$0xff]  }
  0xc6   :  { %1265 = vmatpush1.bf16.msra.mxu1 %v2220_v62  ;;  %v2255_v62 = vld [vmem:[#allocation7 + $0x22c] ss:$12 sps:$4 sm:$0xff]  }
  0xc7   :  { %1277 = vmatprep.subr.bf16.mxu1 %v2227_v0  ;;  %v2256_v0 = vld [vmem:[#allocation7 + $0x230] ss:$12 sps:$4 sm:$0xff]  }
 0x143   :  { %v1912_v2 = vpop.f32.mrb[0].mxu1 }
 0x144   :  { %v1913_v3 = vpop.f32.mrb[1].mxu1 }
 0x145   :  { %v1914_v4 = vadd.f32 %v1913_v3, %v1912_v2  ;;  %v1915_v5 = vpop.f32.mrb[2].mxu1  ;;  %v2257_v2 = vld [vmem:[#allocation8 + $0x80] sm:$0xff]  }
 0x146   :  { %v1916_v6 = vpop.f32.mrb[3].mxu1  ;;  %v2258_v3 = vld [vmem:[#allocation8 + $0x40] sm:$0xff]  }
 0x147   :  { %v1917_v7 = vadd.f32 %v1916_v6, %v1915_v5  ;;  %v681_v13 = vadd.f32 %v1914_v4, %v193_v12  ;;  %v2259_v4 = vld [vmem:[#allocation8] sm:$0xff]   ;;  %v2261_v5 = vld [vmem:[#allocation8 + $0x48] sm:$0xff]  }
 0x148   :  { %v2260_v6 = vld [vmem:[#allocation8 + $0x88] sm:$0xff]  }
 0x149   :  { %v684_v14 = vadd.f32 %v1917_v7, %v193_v12  ;;  %v2262_v7 = vld [vmem:[#allocation8 + $0x8] sm:$0xff]   ;;  %v2265_v12 = vld [vmem:[#allocation8 + $0x10] sm:$0xff]  }
 0x15b   :  { %v721_v15 = vpop.f32.mrb[4].mxu1 }
 0x15c   :  { %v722_v16 = vadd.f32 %v721_v15, %v681_v13  ;;  %v2001_v17 = vpop.f32.mrb[5].mxu1  ;;  %v2267_v13 = vld [vmem:[#allocation8 + $0x58] sm:$0xff]  }
 0x15d   :  { %v724_v18 = vpop.f32.mrb[6].mxu1  ;;  %v2268_v15 = vld [vmem:[#allocation8 + $0x18] sm:$0xff]   ;;  %v2269_v17 = vld [vmem:[#allocation8 + $0xa0] sm:$0xff]  }
 0x15e   :  { %v730_v19 = vmax.f32 %v722_v16, 0.0  ;;  %v725_v20 = vadd.f32 %v724_v18, %v684_v14  ;;  %v2002_v21 = vpop.f32.mrb[7].mxu1  ;;  %v2266_v14 = vld [vmem:[#allocation8 + $0x98] sm:$0xff]   ;;  %v2270_v16 = vld [vmem:[#allocation8 + $0x60] sm:$0xff]  }
 0x15f   :  { %v2271_v18 = vld [vmem:[#allocation8 + $0x20] sm:$0xff]   ;;  %v2274_v21 = vld [vmem:[#allocation8 + $0x28] sm:$0xff]  }
 0x160   :  { %v733_v22 = vmax.f32 %v725_v20, 0.0  ;;  %v2272_v20 = vld [vmem:[#allocation8 + $0xa8] sm:$0xff]  }
 0x162   :  { %v2540_v23 = vpack.c.bf16 %v733_v22, %v730_v19  ;;  %v2273_v19 = vld [vmem:[#allocation8 + $0x68] sm:$0xff]   ;;  %v2275_v22 = vld [vmem:[#allocation8 + $0xb0] sm:$0xff]  }
 0x177   :  { %v637_v28 = vpop.f32.mrb[0].mxu0 }
 0x178   :  { %v2043_v29 = vadd.f32 %v637_v28, %v185_v26  ;;  %v639_v30 = vpop.f32.mrb[1].mxu0  ;;  %v2279_v28 = vld [vmem:[#allocation8 + $0x78] sm:$0xff]  }
 0x179   :  { %v2044_v31 = vadd.f32 %v639_v30, %v189_v27  ;;  %v641_v32 = vpop.f32.mrb[2].mxu0 }
 0x17a   :  { %v2045_v33 = vadd.f32 %v641_v32, %v185_v26  ;;  %v643_v34 = vpop.f32.mrb[3].mxu0  ;;  %v728_v36 = vmax.f32 %v2043_v29, 0.0  ;;  %v2277_v26 = vld [vmem:[#allocation8 + $0x30] sm:$0xff]   ;;  %v2280_v29 = vld [vmem:[#allocation8 + $0x38] sm:$0xff]  }
 0x17b   :  { %v2046_v35 = vadd.f32 %v643_v34, %v189_v27  ;;  %v729_v38 = vmax.f32 %v2044_v31, 0.0  ;;  %v2278_v27 = vld [vmem:[#allocation8 + $0xb8] sm:$0xff]  }
 0x17c   :  { %v731_v37 = vmax.f32 %v2045_v33, 0.0 }
 0x17d   :  { %v732_v39 = vmax.f32 %v2046_v35, 0.0 }
 0x17e   :  { %v734_v40 = vpack.c.bf16 %v731_v37, %v728_v36  ;;  %v833_v36 = vld [vmem:[%s2601_s4] sm:$0x7] }
 0x17f   :  { %v735_v41 = vpack.c.bf16 %v732_v39, %v729_v38  ;;  %v838_v37 = vrot.slane %v833_v36, %v184_v24  ;;  %v842_v38 = vrot.slane %v833_v36, %v188_v25 }
 0x181   :  { %1266 = vmatprep.mubr.bf16.mxu1 %v735_v41  ;;  %1352 = vmatprep.mubr.bf16.mxu0 %v735_v41 }
 0x182   :  { %1267 = vmatmul.mubr.bf16.vlgmr.msra.gmra.mrb[8].mxu1 %v734_v40  ;;  %1353 = vmatmul.mubr.bf16.vlgmr.msra.gmra.mrb[4].mxu0 %v734_v40 }
 0x183   :  { %1278 = vmatpush1.bf16.msra.mxu1 %v2225_v42  ;;  %2004 = vmatpush3.bf16.msra.mxu0 %v2228_v43 }
 0x184   :  { %1279 = vmatprep.subr.bf16.mxu1 %v2231_v44  ;;  %2005 = vmatprep.subr.bf16.mxu0 %v2409_v50 }
 0x185   :  { %1309 = vmatprep.mubr.bf16.mxu1 %v2411_v1  ;;  %2019 = vmatprep.mubr.msk.bf16.mxu0 %vm2410_vm0, %v2409_v50  ;;  %v2241_v1 = vld [vmem:[#allocation7 + $0x1e0] ss:$12 sps:$4 sm:$0xff]  }
 0x187   :  { %1280 = vmatpush1.bf16.msra.mxu1 %v2229_v45  ;;  %2006 = vmatpush3.bf16.msra.mxu0 %v2232_v46 }
 0x188   :  { %1281 = vmatprep.subr.bf16.mxu1 %v2235_v47  ;;  %2007 = vmatprep.subr.bf16.mxu0 %v2409_v50 }
 0x18b   :  { %1282 = vmatpush1.bf16.msra.mxu1 %v2233_v48  ;;  %2008 = vmatpush3.bf16.msra.mxu0 %v2236_v49 }
 0x18c   :  { %1283 = vmatprep.subr.bf16.mxu1 %v2239_v51  ;;  %2009 = vmatprep.subr.bf16.mxu0 %v2409_v50 }
 0x18f   :  { %1284 = vmatpush1.bf16.msra.mxu1 %v2237_v52  ;;  %2010 = vmatpush3.bf16.msra.mxu0 %v2240_v53 }
 0x190   :  { %1285 = vmatprep.subr.bf16.mxu1 %v2243_v54  ;;  %2011 = vmatprep.subr.bf16.mxu0 %v2409_v50 }
 0x193   :  { %1286 = vmatpush1.bf16.msra.mxu1 %v2241_v1  ;;  %2012 = vmatpush3.bf16.msra.mxu0 %v2244_v55 }
 0x194   :  { %1287 = vmatprep.subr.bf16.mxu1 %v2247_v56  ;;  %2013 = vmatprep.subr.bf16.mxu0 %v2409_v50 }
 0x197   :  { %1288 = vmatpush1.bf16.msra.mxu1 %v2245_v57  ;;  %2014 = vmatpush3.bf16.msra.mxu0 %v2248_v58 }
 0x198   :  { %1289 = vmatprep.subr.bf16.mxu1 %v2251_v59  ;;  %2015 = vmatprep.subr.bf16.mxu0 %v2409_v50 }
 0x19b   :  { %1290 = vmatpush1.bf16.msra.mxu1 %v2249_v60  ;;  %2016 = vmatpush3.bf16.msra.mxu0 %v2252_v61 }
 0x19c   :  { %1291 = vmatprep.subr.bf16.mxu1 %v2255_v62  ;;  %2017 = vmatprep.subr.bf16.mxu0 %v2409_v50 }
 0x19f   :  { %1292 = vmatpush1.bf16.msra.mxu1 %v2253_v63  ;;  %2018 = vmatpush3.bf16.msra.mxu0 %v2256_v0  ;;  %v1862_v0 = vld [vmem:[%s2603_s6] ss:$0 sm:$0xff] }
 0x1a0   :  { %2023 = vmatprep.subr.bf16.mxu1 %v2409_v50  ;;  %1956 = vmatprep.subr.bf16.mxu0 %v2258_v3 }
 0x1a2   :  { %1310 = vmatmul.mubr.bf16.vlgmr.msra.gmra.mrb[8].mxu1 %v2540_v23  ;;  %2020 = vmatmul.mubr.bf16.vlgmr.msra.gmra.mrb[8].mxu0 %v2540_v23  ;;  %v2276_v23 = vld [vmem:[#allocation8 + $0x70] sm:$0xff]  }
 0x1a3   :  { %2039 = vmatprep.mubr.msk.bf16.mxu1 %vm2410_vm0, %v2409_v50  ;;  %2024 = vmatpush3.bf16.msra.mxu1 %v2257_v2 }
 0x1a4   :  { %1957 = vmatpush3.bf16.msra.mxu0 %v2259_v4  ;;  %2025 = vmatprep.subr.bf16.mxu1 %v2409_v50 }
 0x1a5   :  { %1958 = vmatprep.subr.bf16.mxu0 %v2261_v5 }
 0x1a7   :  { %2026 = vmatpush3.bf16.msra.mxu1 %v2260_v6 }
 0x1a8   :  { %1959 = vmatpush3.bf16.msra.mxu0 %v2262_v7  ;;  %2027 = vmatprep.subr.bf16.mxu1 %v2409_v50 }
 0x1a9   :  { %1960 = vmatprep.subr.bf16.mxu0 %v2264_v8 }
 0x1ab   :  { %2028 = vmatpush3.bf16.msra.mxu1 %v2263_v11 }
 0x1ac   :  { %1961 = vmatpush3.bf16.msra.mxu0 %v2265_v12  ;;  %2029 = vmatprep.subr.bf16.mxu1 %v2409_v50 }
 0x1ad   :  { %1962 = vmatprep.subr.bf16.mxu0 %v2267_v13 }
 0x1af   :  { %2030 = vmatpush3.bf16.msra.mxu1 %v2266_v14 }
 0x1b0   :  { %1963 = vmatpush3.bf16.msra.mxu0 %v2268_v15  ;;  %2031 = vmatprep.subr.bf16.mxu1 %v2409_v50 }
 0x1b1   :  { %1964 = vmatprep.subr.bf16.mxu0 %v2270_v16 }
 0x1b3   :  { %2032 = vmatpush3.bf16.msra.mxu1 %v2269_v17 }
 0x1b4   :  { %1965 = vmatpush3.bf16.msra.mxu0 %v2271_v18  ;;  %2033 = vmatprep.subr.bf16.mxu1 %v2409_v50 }
 0x1b5   :  { %1966 = vmatprep.subr.bf16.mxu0 %v2273_v19 }
 0x1b7   :  { %2034 = vmatpush3.bf16.msra.mxu1 %v2272_v20 }
 0x1b8   :  { %2035 = vmatprep.subr.bf16.mxu1 %v2409_v50  ;;  %1967 = vmatpush3.bf16.msra.mxu0 %v2274_v21 }
 0x1b9   :  { %1968 = vmatprep.subr.bf16.mxu0 %v2276_v23 }
 0x1bb   :  { %2036 = vmatpush3.bf16.msra.mxu1 %v2275_v22 }
 0x1bc   :  { %2037 = vmatprep.subr.bf16.mxu1 %v2409_v50  ;;  %1969 = vmatpush3.bf16.msra.mxu0 %v2277_v26  ;;  %v846_v50 = vrot.slane %v833_v36, %v192_v10 }
 0x1bd   :  { %1970 = vmatprep.subr.bf16.mxu0 %v2279_v28 }
 0x1bf   :  { %2038 = vmatpush3.bf16.msra.mxu1 %v2278_v27 }
 0x1c0   :  { %1971 = vmatpush3.bf16.msra.mxu0 %v2280_v29 }
 0x255   :  { %v1941_v30 = vpop.f32.mrb[4].mxu0 }
 0x256   :  { %v1942_v31 = vpop.f32.mrb[5].mxu0 }
 0x257   :  { %v1943_v32 = vadd.f32 %v1942_v31, %v1941_v30  ;;  %v1944_v33 = vpop.f32.mrb[6].mxu0 }
 0x258   :  { %v1945_v34 = vpop.f32.mrb[7].mxu0 }
 0x259   :  { %v1946_v35 = vadd.f32 %v1945_v34, %v1944_v33  ;;  %v1355_v39 = vadd.f32 %v1943_v32, %v846_v50 }
 0x25b   :  { %v1358_v46 = vadd.f32 %v1946_v35, %v846_v50 }
 0x275   :  { %v1311_v40 = vpop.f32.mrb[8].mxu1  ;;  %v1395_v41 = vpop.f32.mrb[8].mxu0 }
 0x276   :  { %v2047_v42 = vadd.f32 %v1311_v40, %v838_v37  ;;  %v1396_v43 = vadd.f32 %v1395_v41, %v1355_v39  ;;  %v1313_v44 = vpop.f32.mrb[9].mxu1  ;;  %v2021_v45 = vpop.f32.mrb[9].mxu0 }
 0x277   :  { %v2048_v47 = vadd.f32 %v1313_v44, %v842_v38  ;;  %v1315_v48 = vpop.f32.mrb[10].mxu1  ;;  %v1398_v49 = vpop.f32.mrb[10].mxu0 }
 0x278   :  { %v2049_v51 = vadd.f32 %v1315_v48, %v838_v37  ;;  %v1399_v52 = vadd.f32 %v1398_v49, %v1358_v46  ;;  %v1317_v10 = vpop.f32.mrb[11].mxu1  ;;  %v2022_v53 = vpop.f32.mrb[11].mxu0  ;;  %v1402_v24 = vmax.f32 %v2047_v42, 0.0  ;;  %v1404_v1 = vmax.f32 %v1396_v43, 0.0 }
 0x279   :  { %v2050_v54 = vadd.f32 %v1317_v10, %v842_v38  ;;  %v1403_v55 = vmax.f32 %v2048_v47, 0.0 }
 0x27a   :  { %v1405_v9 = vmax.f32 %v2049_v51, 0.0  ;;  %v1407_v25 = vmax.f32 %v1399_v52, 0.0 }
 0x27b   :  { %v1406_v56 = vmax.f32 %v2050_v54, 0.0 }
 0x27c   :  { %v1408_v57 = vpack.c.bf16 %v1405_v9, %v1402_v24  ;;  %v1410_v58 = vpack.c.bf16 %v1407_v25, %v1404_v1 }
 0x27d   :  { %v1409_v59 = vpack.c.bf16 %v1406_v56, %v1403_v55 }
 0x27e   :  { %2040 = vmatmul.mubr.bf16.vlgmr.msra.gmra.mrb[12].mxu1 %v1410_v58 }
 0x27f   :  { %1642 = vmatprep.mubr.bf16.mxu0 %v1409_v59 }
 0x280   :  { %1643 = vmatmul.mubr.bf16.vlgmr.msra.gmra.mrb[12].mxu0 %v1408_v57 }
 0x351   :  { %v1685_v60 = vpop.f32.mrb[12].mxu1 }
 0x352   :  { %v2041_v61 = vpop.f32.mrb[13].mxu1 }
 0x353   :  { %v1972_v62 = vpop.f32.mrb[12].mxu0  ;;  %v1688_v63 = vpop.f32.mrb[14].mxu1 }
 0x354   :  { %v1973_v2 = vpop.f32.mrb[13].mxu0  ;;  %v2042_v3 = vpop.f32.mrb[15].mxu1 }
 0x355   :  { %v1974_v4 = vadd.f32 %v1973_v2, %v1972_v62  ;;  %v1975_v5 = vpop.f32.mrb[14].mxu0 }
 0x356   :  { %v1976_v6 = vpop.f32.mrb[15].mxu0 }
 0x357   :  { %v1645_v7 = vadd.f32 %v1974_v4, %v1862_v0  ;;  %v1977_v8 = vadd.f32 %v1976_v6, %v1975_v5 }
 0x359   :  { %v1686_v11 = vadd.f32 %v1685_v60, %v1645_v7  ;;  %v1648_v12 = vadd.f32 %v1977_v8, %v1862_v0 }
 0x35b   :  { %v1689_v13 = vadd.f32 %v1688_v63, %v1648_v12 }
 0x35d   :  { %v1894_v14 = vpack.c.bf16 %v1689_v13, %v1686_v11 }
 0x35f   :  { %1895 = vst [vmem:[#allocation10] sm:$0xff] %v1894_v14  }
 0x360   :  { %2380 = shalt.err (!%p2377_p8)
}
 0x361   :  { %s2381_s14 = scalar_lea.hbm %s2604_s7, 128 }
 0x362   :  { %p2382_p9 = scmp.ne.s32.totalorder %s2604_s7, %s2381_s14  ;;  %p2385_p10 = scmp.lt.u32.totalorder %s2381_s14, %s2604_s7 }
 0x364   :  { %p2387_p11 = pnand %p2385_p10, %p2382_p9 }
 0x366   :  { %2390 = shalt.err (!%p2387_p11)
}
 0x367   :  { %1713 = dma.vmem_to_hbm [thread:$0]  %s1708_s9, 128, %s2604_s7, [#allocation4], %s2407_s3, %s2407_s3, %s2408_s11  }
 0x368   :  { %2397 = dma.done.wait [#allocation4], 128  }
 0x369   :  { %2398 = vsyncadd [#allocation4], 4294967168 }
 0x36a   :  { %1717 = vsyncpa [#allocation3], 1 }
 0x36b   :  { %1718 = vsyncpa [#allocation6], 1 }
 0x36c   :  { %1719 = vsyncpa [#allocation9], 1 }
 0x36d   :  { %1720 = vsyncpa [#allocation4], 1 }

</bundles_post_ra>
